<compile_context>
chip_gen: v7x
topology: tpu7x:2x2x1
jax: 0.10.0
libtpu: 0.0.40
codegen_flags: <defaults>
</compile_context>

<pallas_src>
import jax
import jax.numpy as jnp
from jax.experimental import pallas as pl
from jax.experimental.pallas import tpu as pltpu

HEADS = 12
HEAD_DIM = 64
HIDDEN = HEADS * HEAD_DIM  # 768


def module_m_forward(x76, x68):
    """Zero-cost implementation of M.forward (recommended path).

    `.view` on a contiguous tensor is metadata-only; jnp.reshape of a
    contiguous array is likewise free (no HBM traffic, no kernel).
    x76 must be a static Python tuple of ints (it is in the module spec).
    """
    return jnp.reshape(x68, tuple(x76) + (HEADS, HEAD_DIM))


def _hbm_copy_kernel(x_hbm, o_hbm, sem):
    # Single whole-array HBM -> HBM DMA.  No VMEM staging, no tiling,
    # VMEM-budget-independent, so identical behaviour on v5e/v6e/v7x.
    cp = pltpu.make_async_copy(x_hbm, o_hbm, sem)
    cp.start()
    cp.wait()


def module_m_forward_pallas(x76, x68):
    """Pallas anchor variant of M.forward.

    Keeps the module semantics (returns a [*x76, 12, 64] array equal to the
    view) but performs at most one HBM read + one HBM write via a whole-array
    DMA.  The (12, 64) split is done as a free metadata reshape in the
    wrapper, so the kernel never relayouts data and stays purely DMA-bound.
    """
    out_shape_tuple = tuple(x76) + (HEADS, HEAD_DIM)
    b, s, h = x68.shape
    assert h == HIDDEN
    assert (b, s) == tuple(x76)

    copied = pl.pallas_call(
        _hbm_copy_kernel,
        out_shape=jax.ShapeDtypeStruct((b, s, HIDDEN), x68.dtype),
        in_specs=[pl.BlockSpec(memory_space=pl.ANY)],
        out_specs=pl.BlockSpec(memory_space=pl.ANY),
        scratch_shapes=[pltpu.SemaphoreType.DMA],
    )(x68)

    # Free metadata reshape to the module's (b, s, 12, 64) output.
    out = copied.reshape(out_shape_tuple)
    assert out.shape == out_shape_tuple
    return out


if __name__ == "__main__":
    key = jax.random.PRNGKey(0)
    # Shapes from the module spec: [1, 384, 768] (hidden must be 768 = 12*64).
    seq = 384
    x68 = jax.random.normal(key, (1, seq, HIDDEN), dtype=jnp.float32)
    x76 = (1, seq)

    # Reference semantics of .view: plain reshape (the recommended path).
    ref = module_m_forward(x76, x68)
    jax.block_until_ready(ref)

    # Pallas anchor path (single HBM->HBM DMA, no VMEM staging).
    y = module_m_forward_pallas(x76, x68)
    jax.block_until_ready(y)

    assert y.shape == (1, seq, HEADS, HEAD_DIM)
    assert ref.shape == (1, seq, HEADS, HEAD_DIM)
    assert jnp.array_equal(y, ref)

    print("KERNEL_OK")
</pallas_src>

<mosaic_0001>
module attributes {stable_mosaic.version = 11 : i64} {
  func.func @_hbm_copy_kernel(%arg0: memref<1x384x768xf32, #tpu.memory_space<any>>, %arg1: memref<1x384x768xf32, #tpu.memory_space<any>>, %arg2: memref<!tpu.dma_semaphore, #tpu.memory_space<semaphore_mem>>) attributes {dimension_semantics = [], scalar_prefetch = 0 : i64, scratch_operands = 1 : i64, tpu.core_type = #tpu.core_type<tc>} {
    tpu.enqueue_dma source(%arg0 : memref<1x384x768xf32, #tpu.memory_space<any>>) target(%arg1 : memref<1x384x768xf32, #tpu.memory_space<any>>) target_semaphore(%arg2 : memref<!tpu.dma_semaphore, #tpu.memory_space<semaphore_mem>>)
    tpu.wait_dma2 semaphore(%arg2 : memref<!tpu.dma_semaphore, #tpu.memory_space<semaphore_mem>>) src(%arg0 : memref<1x384x768xf32, #tpu.memory_space<any>>) dst(%arg1 : memref<1x384x768xf32, #tpu.memory_space<any>>)
    return
  }
}

</mosaic_0001>

<bundles_post_ra>
// kernel: tpu_custom_call.1
= control target key start
LH: loop header
LB: loop body
LE: loop exit
PB: predicated region body
PF: predicated region fallthrough
CT: control target
= control target key end

     0   :  { %s36_s6 = smov [#allocation2]   ;;  %s37_s7 = smov [#allocation3]   ;;  %s55_s0 = inlined_call_operand.hbm [shape: f32[1,384,768], index: 0, kind: input, shape index: {}]   ;;  %s56_s1 = inlined_call_operand.hbm [shape: f32[1,384,768], index: 1, kind: output, shape index: {}]  }
   0x1   :  { %s38_s8 = smov 0  }
   0x2   :  { %18 = dma.general %s55_s0, 36864, %s56_s1, %s36_s6, %s37_s7, [#allocation4], %s38_s8, 0  }
   0x3   :  { %34 = dma.done.wait [#allocation2], 36864 }
   0x4   :  { %35 = vsyncadd [#allocation2], 4294930432 }
   0x5   :  { %24 = vsyncmov [#allocation2] }
   0x8   :  { %s25_s13 = vpop.sfrf %24 }
   0x9   :  { %p30_p0 = scmp.ne.s32.totalorder %s25_s13, 0 }
   0xb   :  { %29 = shalt.err (%p30_p0)  }

</bundles_post_ra>
